<compile_context>
chip_gen: v5e
topology: v5e:2x2
jax: 0.10.0
libtpu: 0.0.40
codegen_flags: <defaults>
</compile_context>

<pallas_src>
import functools

import jax
import jax.numpy as jnp
from jax import lax
from jax.experimental import pallas as pl
from jax.experimental.pallas import tpu as pltpu


def _lstm_head_kernel(x_ref, gp_ref, op_ref, out_ref, hs_ref, *, D, Dp, H):
    """Single-layer LSTM (batch=1) + Linear + LogSoftmax in one kernel.

    x_ref  : (T, D)            input sequence
    gp_ref : (Dp+H+1, 4H)      rows [0:D]=W_ih^T, [Dp:Dp+H]=W_hh^T, [Dp+H]=b
                               (g-gate columns pre-scaled by 2)
    op_ref : (H+1, Cp)         rows [0:H]=W_out^T zero-padded to Cp lanes,
                               [H]=b_out with -1e30 in the padded lanes
    out_ref: (T, Cp)           lane-dense log-probabilities (first C valid)
    hs_ref : (T, H) VMEM       hidden states over time (scratch)
    """
    T = x_ref.shape[0]

    # Parameter views (all slice starts are 8-sublane aligned).
    wih = gp_ref[0:D, :]                       # (D, 4H)
    whh = gp_ref[Dp:Dp + H, :]                 # (H, 4H) -- resident across loop
    b = gp_ref[Dp + H:Dp + H + 1, :]           # (1, 4H)

    # Input projections for all timesteps at once (one MXU matmul).
    xg = jnp.dot(x_ref[...], wih, preferred_element_type=jnp.float32) + b

    # h/c carried in vregs -- no VMEM round trips on the serial recurrence chain.
    h = jnp.zeros((1, H), jnp.float32)
    c = jnp.zeros((1, H), jnp.float32)

    # T is static and tiny -> full static unroll (LLO overlaps across steps).
    for t in range(T):
        gates = xg[t:t + 1, :] + jnp.dot(h, whh,
                                         preferred_element_type=jnp.float32)
        # Single EUP push over the whole (1, 4H) gate vector.
        # PyTorch gate order: i, f, g, o.  g-columns carry 2*z_g, so
        # tanh(z_g) = 2*sigmoid(2*z_g) - 1 is a free VPU fixup.
        sig = jax.nn.sigmoid(gates)
        i_g = sig[:, 0:H]
        f_g = sig[:, H:2 * H]
        g_g = 2.0 * sig[:, 2 * H:3 * H] - 1.0
        o_g = sig[:, 3 * H:4 * H]
        c = f_g * c + i_g * g_g
        h = o_g * jnp.tanh(c)                  # second (and last) EUP push
        hs_ref[t:t + 1, :] = h                 # off critical path, static index

    # Dropout(0.1) in eval mode is identity -> straight to the classifier.
    # TODO(synk): training-mode dropout would need pltpu.prng_seed/prng_random_bits.
    wout = op_ref[0:H, :]                      # (H, Cp) lane-padded
    bout = op_ref[H:H + 1, :]                  # (1, Cp); padded lanes = -1e30
    logits = jnp.dot(hs_ref[...], wout,
                     preferred_element_type=jnp.float32) + bout

    # LogSoftmax over the class axis; padded lanes hold -1e30 so they do not
    # affect the max or the logsumexp.
    m = jnp.max(logits, axis=-1, keepdims=True)
    shifted = logits - m
    lse = jnp.log(jnp.sum(jnp.exp(shifted), axis=-1, keepdims=True))
    out_ref[...] = (shifted - lse).astype(out_ref.dtype)


def prepare_params(params):
    """One-time parameter packing (hoisted out of the per-call path).

    Returns two lane/sublane-aligned f32 slabs plus static dims.
    """
    H = params["w_hh"].shape[1]
    D = params["w_ih"].shape[1]
    C = params["w_out"].shape[0]
    H4 = 4 * H
    Dp = ((D + 7) // 8) * 8                    # sublane-align the W_hh segment
    Cp = ((C + 127) // 128) * 128              # lane-dense classifier width

    wih_t = params["w_ih"].T.astype(jnp.float32)                 # (D, 4H)
    whh_t = params["w_hh"].T.astype(jnp.float32)                 # (H, 4H)
    b = (params["b_ih"] + params["b_hh"]).astype(jnp.float32)    # (4H,)

    # Bake a 2x scale into the g-gate columns (PyTorch order i,f,g,o) so the
    # kernel can recover tanh via a single sigmoid push.
    gscale = jnp.ones((H4,), jnp.float32).at[2 * H:3 * H].set(2.0)
    wih_t = wih_t * gscale
    whh_t = whh_t * gscale
    b = b * gscale

    gate_slab = jnp.zeros((Dp + H + 1, H4), jnp.float32)
    gate_slab = gate_slab.at[0:D, :].set(wih_t)
    gate_slab = gate_slab.at[Dp:Dp + H, :].set(whh_t)
    gate_slab = gate_slab.at[Dp + H, :].set(b)

    wout_t = params["w_out"].T.astype(jnp.float32)               # (H, C)
    bout = params["b_out"].astype(jnp.float32)                   # (C,)
    out_slab = jnp.zeros((H + 1, Cp), jnp.float32)
    out_slab = out_slab.at[0:H, 0:C].set(wout_t)
    out_slab = out_slab.at[H, :].set(jnp.full((Cp,), -1e30, jnp.float32))
    out_slab = out_slab.at[H, 0:C].set(bout)

    return {
        "gate_slab": jax.device_put(gate_slab),
        "out_slab": jax.device_put(out_slab),
        "dims": (D, Dp, H, C, Cp),
    }


def build_forward(prepared):
    """Returns a jitted forward(x) closing over the prepacked parameters."""
    gate_slab = prepared["gate_slab"]
    out_slab = prepared["out_slab"]
    D, Dp, H, C, Cp = prepared["dims"]
    kernel = functools.partial(_lstm_head_kernel, D=D, Dp=Dp, H=H)
    vmem = pltpu.MemorySpace.VMEM

    @jax.jit
    def forward(x):
        # x: (1, T, D) batch-first, like the PyTorch module.  Returns (T, C).
        assert x.ndim == 3 and x.shape[0] == 1, "forward assumes batch == 1"
        x2d = x[0].astype(jnp.float32)         # squeeze(0) -> (T, D)
        T = x2d.shape[0]
        out_pad = pl.pallas_call(
            kernel,
            out_shape=jax.ShapeDtypeStruct((T, Cp), jnp.float32),
            in_specs=[pl.BlockSpec(memory_space=vmem)] * 3,
            out_specs=pl.BlockSpec(memory_space=vmem),
            scratch_shapes=[
                pltpu.VMEM((T, H), jnp.float32),   # hidden states over time
            ],
        )(x2d, gate_slab, out_slab)
        return out_pad[:, :C]                  # drop padded logit lanes

    return forward


def _reference_forward(x, params):
    """Pure-JAX reference of the same forward for a sanity check."""
    x2d = x[0]
    H = params["w_hh"].shape[1]
    b = params["b_ih"] + params["b_hh"]

    def step(carry, xt):
        h, c = carry
        gates = xt @ params["w_ih"].T + h @ params["w_hh"].T + b
        i_g = jax.nn.sigmoid(gates[0:H])
        f_g = jax.nn.sigmoid(gates[H:2 * H])
        g_g = jnp.tanh(gates[2 * H:3 * H])
        o_g = jax.nn.sigmoid(gates[3 * H:4 * H])
        c_new = f_g * c + i_g * g_g
        h_new = o_g * jnp.tanh(c_new)
        return (h_new, c_new), h_new

    init = (jnp.zeros((H,), jnp.float32), jnp.zeros((H,), jnp.float32))
    _, hs = lax.scan(step, init, x2d)
    logits = hs @ params["w_out"].T + params["b_out"]
    return jax.nn.log_softmax(logits, axis=1)


def init_params(key, input_dim, rnn_hidden, classes):
    """Deterministic synthetic params matching torch.nn.LSTM/Linear shapes."""
    ks = jax.random.split(key, 6)
    k = 1.0 / jnp.sqrt(rnn_hidden)
    u = lambda kk, shp: jax.random.uniform(kk, shp, jnp.float32, -k, k)
    return {
        "w_ih": u(ks[0], (4 * rnn_hidden, input_dim)),
        "w_hh": u(ks[1], (4 * rnn_hidden, rnn_hidden)),
        "b_ih": u(ks[2], (4 * rnn_hidden,)),
        "b_hh": u(ks[3], (4 * rnn_hidden,)),
        "w_out": u(ks[4], (classes, rnn_hidden)),
        "b_out": u(ks[5], (classes,)),
    }


if __name__ == "__main__":
    # Small shapes consistent with the module: batch=1 (squeeze(0) implies it),
    # seq=8, input_dim=6 (accel+gyro), rnn_hidden=32, classes=6.
    B, T, D, H, C = 1, 8, 6, 32, 6

    key = jax.random.PRNGKey(0)
    kx, kp = jax.random.split(key)
    x = jax.random.normal(kx, (B, T, D), dtype=jnp.float32)
    params = init_params(kp, D, H, C)

    prepared = prepare_params(params)          # one-time parameter prep
    forward = build_forward(prepared)

    out = jax.block_until_ready(forward(x))

    ref = _reference_forward(x, params)
    assert out.shape == (T, C)
    # Slightly looser tolerance: the sigmoid-only gate formulation
    # (tanh(z) == 2*sigmoid(2z)-1) is mathematically identical but rounds
    # differently at the ULP level across the 8-step recurrence.
    assert jnp.allclose(out, ref, atol=1e-4, rtol=1e-4), "mismatch vs JAX reference"

    print("KERNEL_OK")
</pallas_src>

<mosaic_0001>
module attributes {stable_mosaic.version = 11 : i64} {
  func.func @_lstm_head_kernel(%arg0: memref<8x6xf32, #tpu.memory_space<vmem>>, %arg1: memref<41x128xf32, #tpu.memory_space<vmem>>, %arg2: memref<33x128xf32, #tpu.memory_space<vmem>>, %arg3: memref<8x128xf32, #tpu.memory_space<vmem>>, %arg4: memref<8x32xf32, #tpu.memory_space<vmem>>) attributes {dimension_semantics = [], scalar_prefetch = 0 : i64, scratch_operands = 1 : i64, tpu.core_type = #tpu.core_type<tc>} {
    %c0 = arith.constant 0 : index
    %c0_0 = arith.constant 0 : index
    %0 = vector.load %arg1[%c0, %c0_0] : memref<41x128xf32, #tpu.memory_space<vmem>>, vector<6x128xf32>
    %c8 = arith.constant 8 : index
    %c0_1 = arith.constant 0 : index
    %1 = vector.load %arg1[%c8, %c0_1] : memref<41x128xf32, #tpu.memory_space<vmem>>, vector<32x128xf32>
    %c40 = arith.constant 40 : index
    %c0_2 = arith.constant 0 : index
    %2 = vector.load %arg1[%c40, %c0_2] : memref<41x128xf32, #tpu.memory_space<vmem>>, vector<1x128xf32>
    %c0_3 = arith.constant 0 : index
    %c0_4 = arith.constant 0 : index
    %3 = vector.load %arg0[%c0_3, %c0_4] : memref<8x6xf32, #tpu.memory_space<vmem>>, vector<8x6xf32>
    %cst = arith.constant dense<0.000000e+00> : vector<8x128xf32>
    %4 = tpu.matmul %3, %0, %cst {dimension_numbers = #tpu.dot_dimension_numbers<[1], [0], [0], [1], [0, 0, 1, 1], [], []>} : vector<8x6xf32>, vector<6x128xf32>, vector<8x128xf32> -> vector<8x128xf32>
    %5 = vector.broadcast %2 : vector<1x128xf32> to vector<8x128xf32>
    %6 = arith.addf %4, %5 : vector<8x128xf32>
    %cst_5 = arith.constant 0.000000e+00 : f32
    %7 = vector.broadcast %cst_5 : f32 to vector<1x32xf32>
    %cst_6 = arith.constant 0.000000e+00 : f32
    %8 = vector.broadcast %cst_6 : f32 to vector<1x32xf32>
    %9 = vector.extract_strided_slice %6 {offsets = [0, 0], sizes = [1, 128], strides = [1, 1]} : vector<8x128xf32> to vector<1x128xf32>
    %cst_7 = arith.constant dense<0.000000e+00> : vector<1x128xf32>
    %10 = tpu.matmul %7, %1, %cst_7 {dimension_numbers = #tpu.dot_dimension_numbers<[1], [0], [0], [1], [0, 0, 1, 1], [], []>} : vector<1x32xf32>, vector<32x128xf32>, vector<1x128xf32> -> vector<1x128xf32>
    %11 = arith.addf %9, %10 : vector<1x128xf32>
    %12 = arith.negf %11 : vector<1x128xf32>
    %13 = math.exp %12 : vector<1x128xf32>
    %cst_8 = arith.constant 1.000000e+00 : f32
    %14 = vector.broadcast %cst_8 : f32 to vector<1x128xf32>
    %15 = arith.addf %14, %13 : vector<1x128xf32>
    %16 = arith.divf %14, %15 : vector<1x128xf32>
    %17 = vector.extract_strided_slice %16 {offsets = [0, 0], sizes = [1, 32], strides = [1, 1]} : vector<1x128xf32> to vector<1x32xf32>
    %18 = vector.extract_strided_slice %16 {offsets = [0, 32], sizes = [1, 32], strides = [1, 1]} : vector<1x128xf32> to vector<1x32xf32>
    %19 = vector.extract_strided_slice %16 {offsets = [0, 64], sizes = [1, 32], strides = [1, 1]} : vector<1x128xf32> to vector<1x32xf32>
    %cst_9 = arith.constant 2.000000e+00 : f32
    %20 = vector.broadcast %cst_9 : f32 to vector<1x32xf32>
    %21 = arith.mulf %20, %19 : vector<1x32xf32>
    %cst_10 = arith.constant 1.000000e+00 : f32
    %22 = vector.broadcast %cst_10 : f32 to vector<1x32xf32>
    %23 = arith.subf %21, %22 : vector<1x32xf32>
    %24 = vector.extract_strided_slice %16 {offsets = [0, 96], sizes = [1, 32], strides = [1, 1]} : vector<1x128xf32> to vector<1x32xf32>
    %25 = arith.mulf %18, %8 : vector<1x32xf32>
    %26 = arith.mulf %17, %23 : vector<1x32xf32>
    %27 = arith.addf %25, %26 : vector<1x32xf32>
    %28 = math.tanh %27 : vector<1x32xf32>
    %29 = arith.mulf %24, %28 : vector<1x32xf32>
    %c0_11 = arith.constant 0 : index
    %c0_12 = arith.constant 0 : index
    %30 = vector.load %arg4[%c0_11, %c0_12] : memref<8x32xf32, #tpu.memory_space<vmem>>, vector<1x32xf32>
    tpu.vector_store %arg4[%c0_11, %c0_12], %29 {strides = array<i32>} : memref<8x32xf32, #tpu.memory_space<vmem>>, vector<1x32xf32>,
    %31 = vector.extract_strided_slice %6 {offsets = [1, 0], sizes = [1, 128], strides = [1, 1]} : vector<8x128xf32> to vector<1x128xf32>
    %cst_13 = arith.constant dense<0.000000e+00> : vector<1x128xf32>
    %32 = tpu.matmul %29, %1, %cst_13 {dimension_numbers = #tpu.dot_dimension_numbers<[1], [0], [0], [1], [0, 0, 1, 1], [], []>} : vector<1x32xf32>, vector<32x128xf32>, vector<1x128xf32> -> vector<1x128xf32>
    %33 = arith.addf %31, %32 : vector<1x128xf32>
    %34 = arith.negf %33 : vector<1x128xf32>
    %35 = math.exp %34 : vector<1x128xf32>
    %cst_14 = arith.constant 1.000000e+00 : f32
    %36 = vector.broadcast %cst_14 : f32 to vector<1x128xf32>
    %37 = arith.addf %36, %35 : vector<1x128xf32>
    %38 = arith.divf %36, %37 : vector<1x128xf32>
    %39 = vector.extract_strided_slice %38 {offsets = [0, 0], sizes = [1, 32], strides = [1, 1]} : vector<1x128xf32> to vector<1x32xf32>
    %40 = vector.extract_strided_slice %38 {offsets = [0, 32], sizes = [1, 32], strides = [1, 1]} : vector<1x128xf32> to vector<1x32xf32>
    %41 = vector.extract_strided_slice %38 {offsets = [0, 64], sizes = [1, 32], strides = [1, 1]} : vector<1x128xf32> to vector<1x32xf32>
    %cst_15 = arith.constant 2.000000e+00 : f32
    %42 = vector.broadcast %cst_15 : f32 to vector<1x32xf32>
    %43 = arith.mulf %42, %41 : vector<1x32xf32>
    %cst_16 = arith.constant 1.000000e+00 : f32
    %44 = vector.broadcast %cst_16 : f32 to vector<1x32xf32>
    %45 = arith.subf %43, %44 : vector<1x32xf32>
    %46 = vector.extract_strided_slice %38 {offsets = [0, 96], sizes = [1, 32], strides = [1, 1]} : vector<1x128xf32> to vector<1x32xf32>
    %47 = arith.mulf %40, %27 : vector<1x32xf32>
    %48 = arith.mulf %39, %45 : vector<1x32xf32>
    %49 = arith.addf %47, %48 : vector<1x32xf32>
    %50 = math.tanh %49 : vector<1x32xf32>
    %51 = arith.mulf %46, %50 : vector<1x32xf32>
    %c1 = arith.constant 1 : index
    %c0_17 = arith.constant 0 : index
    %52 = vector.load %arg4[%c1, %c0_17] : memref<8x32xf32, #tpu.memory_space<vmem>>, vector<1x32xf32>
    tpu.vector_store %arg4[%c1, %c0_17], %51 {strides = array<i32>} : memref<8x32xf32, #tpu.memory_space<vmem>>, vector<1x32xf32>,
    %53 = vector.extract_strided_slice %6 {offsets = [2, 0], sizes = [1, 128], strides = [1, 1]} : vector<8x128xf32> to vector<1x128xf32>
    %cst_18 = arith.constant dense<0.000000e+00> : vector<1x128xf32>
    %54 = tpu.matmul %51, %1, %cst_18 {dimension_numbers = #tpu.dot_dimension_numbers<[1], [0], [0], [1], [0, 0, 1, 1], [], []>} : vector<1x32xf32>, vector<32x128xf32>, vector<1x128xf32> -> vector<1x128xf32>
    %55 = arith.addf %53, %54 : vector<1x128xf32>
    %56 = arith.negf %55 : vector<1x128xf32>
    %57 = math.exp %56 : vector<1x128xf32>
    %cst_19 = arith.constant 1.000000e+00 : f32
    %58 = vector.broadcast %cst_19 : f32 to vector<1x128xf32>
    %59 = arith.addf %58, %57 : vector<1x128xf32>
    %60 = arith.divf %58, %59 : vector<1x128xf32>
    %61 = vector.extract_strided_slice %60 {offsets = [0, 0], sizes = [1, 32], strides = [1, 1]} : vector<1x128xf32> to vector<1x32xf32>
    %62 = vector.extract_strided_slice %60 {offsets = [0, 32], sizes = [1, 32], strides = [1, 1]} : vector<1x128xf32> to vector<1x32xf32>
    %63 = vector.extract_strided_slice %60 {offsets = [0, 64], sizes = [1, 32], strides = [1, 1]} : vector<1x128xf32> to vector<1x32xf32>
    %cst_20 = arith.constant 2.000000e+00 : f32
    %64 = vector.broadcast %cst_20 : f32 to vector<1x32xf32>
    %65 = arith.mulf %64, %63 : vector<1x32xf32>
    %cst_21 = arith.constant 1.000000e+00 : f32
    %66 = vector.broadcast %cst_21 : f32 to vector<1x32xf32>
    %67 = arith.subf %65, %66 : vector<1x32xf32>
    %68 = vector.extract_strided_slice %60 {offsets = [0, 96], sizes = [1, 32], strides = [1, 1]} : vector<1x128xf32> to vector<1x32xf32>
    %69 = arith.mulf %62, %49 : vector<1x32xf32>
    %70 = arith.mulf %61, %67 : vector<1x32xf32>
    %71 = arith.addf %69, %70 : vector<1x32xf32>
    %72 = math.tanh %71 : vector<1x32xf32>
    %73 = arith.mulf %68, %72 : vector<1x32xf32>
    %c2 = arith.constant 2 : index
    %c0_22 = arith.constant 0 : index
    %74 = vector.load %arg4[%c2, %c0_22] : memref<8x32xf32, #tpu.memory_space<vmem>>, vector<1x32xf32>
    tpu.vector_store %arg4[%c2, %c0_22], %73 {strides = array<i32>} : memref<8x32xf32, #tpu.memory_space<vmem>>, vector<1x32xf32>,
    %75 = vector.extract_strided_slice %6 {offsets = [3, 0], sizes = [1, 128], strides = [1, 1]} : vector<8x128xf32> to vector<1x128xf32>
    %cst_23 = arith.constant dense<0.000000e+00> : vector<1x128xf32>
    %76 = tpu.matmul %73, %1, %cst_23 {dimension_numbers = #tpu.dot_dimension_numbers<[1], [0], [0], [1], [0, 0, 1, 1], [], []>} : vector<1x32xf32>, vector<32x128xf32>, vector<1x128xf32> -> vector<1x128xf32>
    %77 = arith.addf %75, %76 : vector<1x128xf32>
    %78 = arith.negf %77 : vector<1x128xf32>
    %79 = math.exp %78 : vector<1x128xf32>
    %cst_24 = arith.constant 1.000000e+00 : f32
    %80 = vector.broadcast %cst_24 : f32 to vector<1x128xf32>
    %81 = arith.addf %80, %79 : vector<1x128xf32>
    %82 = arith.divf %80, %81 : vector<1x128xf32>
    %83 = vector.extract_strided_slice %82 {offsets = [0, 0], sizes = [1, 32], strides = [1, 1]} : vector<1x128xf32> to vector<1x32xf32>
    %84 = vector.extract_strided_slice %82 {offsets = [0, 32], sizes = [1, 32], strides = [1, 1]} : vector<1x128xf32> to vector<1x32xf32>
    %85 = vector.extract_strided_slice %82 {offsets = [0, 64], sizes = [1, 32], strides = [1, 1]} : vector<1x128xf32> to vector<1x32xf32>
    %cst_25 = arith.constant 2.000000e+00 : f32
    %86 = vector.broadcast %cst_25 : f32 to vector<1x32xf32>
    %87 = arith.mulf %86, %85 : vector<1x32xf32>
    %cst_26 = arith.constant 1.000000e+00 : f32
    %88 = vector.broadcast %cst_26 : f32 to vector<1x32xf32>
    %89 = arith.subf %87, %88 : vector<1x32xf32>
    %90 = vector.extract_strided_slice %82 {offsets = [0, 96], sizes = [1, 32], strides = [1, 1]} : vector<1x128xf32> to vector<1x32xf32>
    %91 = arith.mulf %84, %71 : vector<1x32xf32>
    %92 = arith.mulf %83, %89 : vector<1x32xf32>
    %93 = arith.addf %91, %92 : vector<1x32xf32>
    %94 = math.tanh %93 : vector<1x32xf32>
    %95 = arith.mulf %90, %94 : vector<1x32xf32>
    %c3 = arith.constant 3 : index
    %c0_27 = arith.constant 0 : index
    %96 = vector.load %arg4[%c3, %c0_27] : memref<8x32xf32, #tpu.memory_space<vmem>>, vector<1x32xf32>
    tpu.vector_store %arg4[%c3, %c0_27], %95 {strides = array<i32>} : memref<8x32xf32, #tpu.memory_space<vmem>>, vector<1x32xf32>,
    %97 = vector.extract_strided_slice %6 {offsets = [4, 0], sizes = [1, 128], strides = [1, 1]} : vector<8x128xf32> to vector<1x128xf32>
    %cst_28 = arith.constant dense<0.000000e+00> : vector<1x128xf32>
    %98 = tpu.matmul %95, %1, %cst_28 {dimension_numbers = #tpu.dot_dimension_numbers<[1], [0], [0], [1], [0, 0, 1, 1], [], []>} : vector<1x32xf32>, vector<32x128xf32>, vector<1x128xf32> -> vector<1x128xf32>
    %99 = arith.addf %97, %98 : vector<1x128xf32>
    %100 = arith.negf %99 : vector<1x128xf32>
    %101 = math.exp %100 : vector<1x128xf32>
    %cst_29 = arith.constant 1.000000e+00 : f32
    %102 = vector.broadcast %cst_29 : f32 to vector<1x128xf32>
    %103 = arith.addf %102, %101 : vector<1x128xf32>
    %104 = arith.divf %102, %103 : vector<1x128xf32>
    %105 = vector.extract_strided_slice %104 {offsets = [0, 0], sizes = [1, 32], strides = [1, 1]} : vector<1x128xf32> to vector<1x32xf32>
    %106 = vector.extract_strided_slice %104 {offsets = [0, 32], sizes = [1, 32], strides = [1, 1]} : vector<1x128xf32> to vector<1x32xf32>
    %107 = vector.extract_strided_slice %104 {offsets = [0, 64], sizes = [1, 32], strides = [1, 1]} : vector<1x128xf32> to vector<1x32xf32>
    %cst_30 = arith.constant 2.000000e+00 : f32
    %108 = vector.broadcast %cst_30 : f32 to vector<1x32xf32>
    %109 = arith.mulf %108, %107 : vector<1x32xf32>
    %cst_31 = arith.constant 1.000000e+00 : f32
    %110 = vector.broadcast %cst_31 : f32 to vector<1x32xf32>
    %111 = arith.subf %109, %110 : vector<1x32xf32>
    %112 = vector.extract_strided_slice %104 {offsets = [0, 96], sizes = [1, 32], strides = [1, 1]} : vector<1x128xf32> to vector<1x32xf32>
    %113 = arith.mulf %106, %93 : vector<1x32xf32>
    %114 = arith.mulf %105, %111 : vector<1x32xf32>
    %115 = arith.addf %113, %114 : vector<1x32xf32>
    %116 = math.tanh %115 : vector<1x32xf32>
    %117 = arith.mulf %112, %116 : vector<1x32xf32>
    %c4 = arith.constant 4 : index
    %c0_32 = arith.constant 0 : index
    %118 = vector.load %arg4[%c4, %c0_32] : memref<8x32xf32, #tpu.memory_space<vmem>>, vector<1x32xf32>
    tpu.vector_store %arg4[%c4, %c0_32], %117 {strides = array<i32>} : memref<8x32xf32, #tpu.memory_space<vmem>>, vector<1x32xf32>,
    %119 = vector.extract_strided_slice %6 {offsets = [5, 0], sizes = [1, 128], strides = [1, 1]} : vector<8x128xf32> to vector<1x128xf32>
    %cst_33 = arith.constant dense<0.000000e+00> : vector<1x128xf32>
    %120 = tpu.matmul %117, %1, %cst_33 {dimension_numbers = #tpu.dot_dimension_numbers<[1], [0], [0], [1], [0, 0, 1, 1], [], []>} : vector<1x32xf32>, vector<32x128xf32>, vector<1x128xf32> -> vector<1x128xf32>
    %121 = arith.addf %119, %120 : vector<1x128xf32>
    %122 = arith.negf %121 : vector<1x128xf32>
    %123 = math.exp %122 : vector<1x128xf32>
    %cst_34 = arith.constant 1.000000e+00 : f32
    %124 = vector.broadcast %cst_34 : f32 to vector<1x128xf32>
    %125 = arith.addf %124, %123 : vector<1x128xf32>
    %126 = arith.divf %124, %125 : vector<1x128xf32>
    %127 = vector.extract_strided_slice %126 {offsets = [0, 0], sizes = [1, 32], strides = [1, 1]} : vector<1x128xf32> to vector<1x32xf32>
    %128 = vector.extract_strided_slice %126 {offsets = [0, 32], sizes = [1, 32], strides = [1, 1]} : vector<1x128xf32> to vector<1x32xf32>
    %129 = vector.extract_strided_slice %126 {offsets = [0, 64], sizes = [1, 32], strides = [1, 1]} : vector<1x128xf32> to vector<1x32xf32>
    %cst_35 = arith.constant 2.000000e+00 : f32
    %130 = vector.broadcast %cst_35 : f32 to vector<1x32xf32>
    %131 = arith.mulf %130, %129 : vector<1x32xf32>
    %cst_36 = arith.constant 1.000000e+00 : f32
    %132 = vector.broadcast %cst_36 : f32 to vector<1x32xf32>
    %133 = arith.subf %131, %132 : vector<1x32xf32>
    %134 = vector.extract_strided_slice %126 {offsets = [0, 96], sizes = [1, 32], strides = [1, 1]} : vector<1x128xf32> to vector<1x32xf32>
    %135 = arith.mulf %128, %115 : vector<1x32xf32>
    %136 = arith.mulf %127, %133 : vector<1x32xf32>
    %137 = arith.addf %135, %136 : vector<1x32xf32>
    %138 = math.tanh %137 : vector<1x32xf32>
    %139 = arith.mulf %134, %138 : vector<1x32xf32>
    %c5 = arith.constant 5 : index
    %c0_37 = arith.constant 0 : index
    %140 = vector.load %arg4[%c5, %c0_37] : memref<8x32xf32, #tpu.memory_space<vmem>>, vector<1x32xf32>
    tpu.vector_store %arg4[%c5, %c0_37], %139 {strides = array<i32>} : memref<8x32xf32, #tpu.memory_space<vmem>>, vector<1x32xf32>,
    %141 = vector.extract_strided_slice %6 {offsets = [6, 0], sizes = [1, 128], strides = [1, 1]} : vector<8x128xf32> to vector<1x128xf32>
    %cst_38 = arith.constant dense<0.000000e+00> : vector<1x128xf32>
    %142 = tpu.matmul %139, %1, %cst_38 {dimension_numbers = #tpu.dot_dimension_numbers<[1], [0], [0], [1], [0, 0, 1, 1], [], []>} : vector<1x32xf32>, vector<32x128xf32>, vector<1x128xf32> -> vector<1x128xf32>
    %143 = arith.addf %141, %142 : vector<1x128xf32>
    %144 = arith.negf %143 : vector<1x128xf32>
    %145 = math.exp %144 : vector<1x128xf32>
    %cst_39 = arith.constant 1.000000e+00 : f32
    %146 = vector.broadcast %cst_39 : f32 to vector<1x128xf32>
    %147 = arith.addf %146, %145 : vector<1x128xf32>
    %148 = arith.divf %146, %147 : vector<1x128xf32>
    %149 = vector.extract_strided_slice %148 {offsets = [0, 0], sizes = [1, 32], strides = [1, 1]} : vector<1x128xf32> to vector<1x32xf32>
    %150 = vector.extract_strided_slice %148 {offsets = [0, 32], sizes = [1, 32], strides = [1, 1]} : vector<1x128xf32> to vector<1x32xf32>
    %151 = vector.extract_strided_slice %148 {offsets = [0, 64], sizes = [1, 32], strides = [1, 1]} : vector<1x128xf32> to vector<1x32xf32>
    %cst_40 = arith.constant 2.000000e+00 : f32
    %152 = vector.broadcast %cst_40 : f32 to vector<1x32xf32>
    %153 = arith.mulf %152, %151 : vector<1x32xf32>
    %cst_41 = arith.constant 1.000000e+00 : f32
    %154 = vector.broadcast %cst_41 : f32 to vector<1x32xf32>
    %155 = arith.subf %153, %154 : vector<1x32xf32>
    %156 = vector.extract_strided_slice %148 {offsets = [0, 96], sizes = [1, 32], strides = [1, 1]} : vector<1x128xf32> to vector<1x32xf32>
    %157 = arith.mulf %150, %137 : vector<1x32xf32>
    %158 = arith.mulf %149, %155 : vector<1x32xf32>
    %159 = arith.addf %157, %158 : vector<1x32xf32>
    %160 = math.tanh %159 : vector<1x32xf32>
    %161 = arith.mulf %156, %160 : vector<1x32xf32>
    %c6 = arith.constant 6 : index
    %c0_42 = arith.constant 0 : index
    %162 = vector.load %arg4[%c6, %c0_42] : memref<8x32xf32, #tpu.memory_space<vmem>>, vector<1x32xf32>
    tpu.vector_store %arg4[%c6, %c0_42], %161 {strides = array<i32>} : memref<8x32xf32, #tpu.memory_space<vmem>>, vector<1x32xf32>,
    %163 = vector.extract_strided_slice %6 {offsets = [7, 0], sizes = [1, 128], strides = [1, 1]} : vector<8x128xf32> to vector<1x128xf32>
    %cst_43 = arith.constant dense<0.000000e+00> : vector<1x128xf32>
    %164 = tpu.matmul %161, %1, %cst_43 {dimension_numbers = #tpu.dot_dimension_numbers<[1], [0], [0], [1], [0, 0, 1, 1], [], []>} : vector<1x32xf32>, vector<32x128xf32>, vector<1x128xf32> -> vector<1x128xf32>
    %165 = arith.addf %163, %164 : vector<1x128xf32>
    %166 = arith.negf %165 : vector<1x128xf32>
    %167 = math.exp %166 : vector<1x128xf32>
    %cst_44 = arith.constant 1.000000e+00 : f32
    %168 = vector.broadcast %cst_44 : f32 to vector<1x128xf32>
    %169 = arith.addf %168, %167 : vector<1x128xf32>
    %170 = arith.divf %168, %169 : vector<1x128xf32>
    %171 = vector.extract_strided_slice %170 {offsets = [0, 0], sizes = [1, 32], strides = [1, 1]} : vector<1x128xf32> to vector<1x32xf32>
    %172 = vector.extract_strided_slice %170 {offsets = [0, 32], sizes = [1, 32], strides = [1, 1]} : vector<1x128xf32> to vector<1x32xf32>
    %173 = vector.extract_strided_slice %170 {offsets = [0, 64], sizes = [1, 32], strides = [1, 1]} : vector<1x128xf32> to vector<1x32xf32>
    %cst_45 = arith.constant 2.000000e+00 : f32
    %174 = vector.broadcast %cst_45 : f32 to vector<1x32xf32>
    %175 = arith.mulf %174, %173 : vector<1x32xf32>
    %cst_46 = arith.constant 1.000000e+00 : f32
    %176 = vector.broadcast %cst_46 : f32 to vector<1x32xf32>
    %177 = arith.subf %175, %176 : vector<1x32xf32>
    %178 = vector.extract_strided_slice %170 {offsets = [0, 96], sizes = [1, 32], strides = [1, 1]} : vector<1x128xf32> to vector<1x32xf32>
    %179 = arith.mulf %172, %159 : vector<1x32xf32>
    %180 = arith.mulf %171, %177 : vector<1x32xf32>
    %181 = arith.addf %179, %180 : vector<1x32xf32>
    %182 = math.tanh %181 : vector<1x32xf32>
    %183 = arith.mulf %178, %182 : vector<1x32xf32>
    %c7 = arith.constant 7 : index
    %c0_47 = arith.constant 0 : index
    %184 = vector.load %arg4[%c7, %c0_47] : memref<8x32xf32, #tpu.memory_space<vmem>>, vector<1x32xf32>
    tpu.vector_store %arg4[%c7, %c0_47], %183 {strides = array<i32>} : memref<8x32xf32, #tpu.memory_space<vmem>>, vector<1x32xf32>,
    %c0_48 = arith.constant 0 : index
    %c0_49 = arith.constant 0 : index
    %185 = vector.load %arg2[%c0_48, %c0_49] : memref<33x128xf32, #tpu.memory_space<vmem>>, vector<32x128xf32>
    %c32 = arith.constant 32 : index
    %c0_50 = arith.constant 0 : index
    %186 = vector.load %arg2[%c32, %c0_50] : memref<33x128xf32, #tpu.memory_space<vmem>>, vector<1x128xf32>
    %c0_51 = arith.constant 0 : index
    %c0_52 = arith.constant 0 : index
    %187 = vector.load %arg4[%c0_51, %c0_52] : memref<8x32xf32, #tpu.memory_space<vmem>>, vector<8x32xf32>
    %cst_53 = arith.constant dense<0.000000e+00> : vector<8x128xf32>
    %188 = tpu.matmul %187, %185, %cst_53 {dimension_numbers = #tpu.dot_dimension_numbers<[1], [0], [0], [1], [0, 0, 1, 1], [], []>} : vector<8x32xf32>, vector<32x128xf32>, vector<8x128xf32> -> vector<8x128xf32>
    %189 = vector.broadcast %186 : vector<1x128xf32> to vector<8x128xf32>
    %190 = arith.addf %188, %189 : vector<8x128xf32>
    %cst_54 = arith.constant dense<0xFF800000> : vector<8xf32>
    %191 = vector.multi_reduction <maximumf>, %190, %cst_54 [1] : vector<8x128xf32> to vector<8xf32>
    %192 = vector.shape_cast %191 : vector<8xf32> to vector<8x1xf32>
    %193 = vector.broadcast %192 : vector<8x1xf32> to vector<8x128xf32>
    %194 = arith.subf %190, %193 : vector<8x128xf32>
    %195 = math.exp %194 : vector<8x128xf32>
    %cst_55 = arith.constant dense<0.000000e+00> : vector<8xf32>
    %196 = vector.multi_reduction <add>, %195, %cst_55 [1] : vector<8x128xf32> to vector<8xf32>
    %197 = vector.shape_cast %196 : vector<8xf32> to vector<8x1xf32>
    %198 = math.log %197 : vector<8x1xf32>
    %199 = vector.broadcast %198 : vector<8x1xf32> to vector<8x128xf32>
    %200 = arith.subf %194, %199 : vector<8x128xf32>
    %c0_56 = arith.constant 0 : index
    %c0_57 = arith.constant 0 : index
    %201 = vector.load %arg3[%c0_56, %c0_57] : memref<8x128xf32, #tpu.memory_space<vmem>>, vector<8x128xf32>
    tpu.vector_store %arg3[%c0_56, %c0_57], %200 {strides = array<i32>} : memref<8x128xf32, #tpu.memory_space<vmem>>, vector<8x128xf32>,
    return
  }
}

</mosaic_0001>

<bundles_post_ra>
// kernel: forward.1
= control target key start
LH: loop header
LB: loop body
LE: loop exit
PB: predicated region body
PF: predicated region fallthrough
CT: control target
= control target key end

     0   :  { %8 = vsyncpa [#allocation4], 0  ;;  %s1022_s0 = inlined_call_operand.vmem [shape: f32[8,6], index: 0, kind: input, shape index: {}]   ;;  %s1023_s1 = inlined_call_operand.hbm [shape: f32[41,128], index: 1, kind: input, shape index: {}]   ;;  %s1024_s2 = inlined_call_operand.hbm [shape: f32[33,128], index: 2, kind: input, shape index: {}]   ;;  %s1025_s3 = inlined_call_operand.hbm [shape: f32[8,128], index: 3, kind: output, shape index: {}]  }
   0x1   :  { %9 = vsyncpa [#allocation7], 0 }
   0x2   :  { %10 = vsyncpa [#allocation5], 0  ;;  %s17_s14 = sshll.u32 %s1023_s1, 4  ;;  %s906_s15 = smov [#allocation3]   ;;  %s18_s14 = int_to_ptr.hbm [resolvable:$true] %s17_s14 }
   0x3   :  { %s19_s16 = sshll.u32 %s906_s15, 4  ;;  %s30_s19 = sshll.u32 %s1024_s2, 4  ;;  %s20_s16 = int_to_ptr.vmem [resolvable:$true] %s19_s16  ;;  %s31_s19 = int_to_ptr.hbm [resolvable:$true] %s30_s19 }
   0x4   :  { %s907_s20 = smov 128   ;;  %s908_s21 = smov 8  }
   0x5   :  { %25 = dma.hbm_to_vmem [thread:$0]  %s18_s14, 768, %s20_s16, [#allocation4], %s907_s20, %s907_s20, %s908_s21  }
   0x6   :  { %s909_s22 = smov [#allocation6]  }
   0x7   :  { %s32_s23 = sshll.u32 %s909_s22, 4  ;;  %s33_s23 = int_to_ptr.vmem [resolvable:$true] %s32_s23 }
   0x8   :  { %38 = dma.hbm_to_vmem [thread:$0]  %s31_s19, 640, %s33_s23, [#allocation7], %s907_s20, %s907_s20, %s908_s21  }
   0x9   :  { %900 = dma.done.wait [#allocation4], 768  }
   0xa   :  { %901 = vsyncadd [#allocation4], 4294966528 }
   0xb   :  { %902 = dma.done.wait [#allocation7], 640  }
   0xc   :  { %903 = vsyncadd [#allocation7], 4294966656  ;;  %vm59_vm0 = vcmask 1045504   ;;  %vm55_vm1 = vcmask 48128   ;;  %v51_v0 = vld [vmem:[#allocation3 + $0x20] sm:$0xff]  ;;  %v50_v1 = vld [vmem:[#allocation3 + $0x18] sm:$0xff] }
   0xd   :  { %v47_v2 = vld [vmem:[#allocation3] sm:$0x3f]  ;;  %99 = vmatpush.msra.mxu1 %v51_v0  ;;  %v53_v3 = vld [vmem:[%s1022_s0] sm:$0xff]  ;;  %v49_v4 = vld [vmem:[#allocation3 + $0x10] sm:$0xff]  ;;  %166 = vmatpush.msra.mxu2 %v51_v0  ;;  %v910_v6 = vmov 0.0   ;;  %s911_s0 = smov 64  }
   0xe   :  { %740 = vmatpush.msk.msra.mxu0 %vm59_vm0, %v47_v2  ;;  %242 = vmatpush.msra.mxu3 %v51_v0  ;;  %v48_v5 = vld [vmem:[#allocation3 + $0x8] sm:$0xff]  ;;  %s912_s24 = smov 32   ;;  %vm150_vm6 = vcmask 253952   ;;  %vm83_vm7 = vcmask 261120   ;;  %s913_s25 = smov [#allocation8]  }
   0xf   :  { %741 = vmatmul.msk.f32.vlgmr.msra.gmra.mxu0 %vm55_vm1, %v53_v3  ;;  %100 = vmatpush.msra.mxu1 %v50_v1  ;;  %v774_v7 = vld [vmem:[#allocation3 + $0x28] ss:$0 sm:$0xff]  ;;  %s727_s26 = sshll.u32 %s913_s25, 4  ;;  %s729_s29 = sshll.u32 %s1025_s3, 4  ;;  %s728_s26 = int_to_ptr.vmem [resolvable:$true] %s727_s26  ;;  %s730_s29 = int_to_ptr.hbm [resolvable:$true] %s729_s29 }
  0x10   :  { %167 = vmatpush.msra.mxu2 %v50_v1  ;;  %318 = vmatpush.msrb.mxu0 %v51_v0 }
  0x11   :  { %101 = vmatpush.msra.mxu1 %v49_v4  ;;  %243 = vmatpush.msra.mxu3 %v50_v1 }
  0x12   :  { %168 = vmatpush.msra.mxu2 %v49_v4  ;;  %319 = vmatpush.msrb.mxu0 %v50_v1 }
  0x13   :  { %102 = vmatpush.msra.mxu1 %v48_v5  ;;  %244 = vmatpush.msra.mxu3 %v49_v4 }
  0x14   :  { %103 = vmatmul.f32.vlgmr.msra.gmra.mxu1 %v910_v6  ;;  %169 = vmatpush.msra.mxu2 %v48_v5 }
  0x15   :  { %245 = vmatpush.msra.mxu3 %v48_v5  ;;  %320 = vmatpush.msrb.mxu0 %v49_v4 }
  0x16   :  { %394 = vmatpush.msrb.mxu1 %v51_v0  ;;  %470 = vmatpush.msrb.mxu2 %v51_v0 }
  0x17   :  { %321 = vmatpush.msrb.mxu0 %v48_v5  ;;  %546 = vmatpush.msrb.mxu3 %v51_v0 }
  0x18   :  { %395 = vmatpush.msrb.mxu1 %v50_v1  ;;  %471 = vmatpush.msrb.mxu2 %v50_v1 }
  0x19   :  { %547 = vmatpush.msrb.mxu3 %v50_v1  ;;  %622 = vmatpush.msra.mxu0 %v51_v0 }
  0x1a   :  { %396 = vmatpush.msrb.mxu1 %v49_v4  ;;  %472 = vmatpush.msrb.mxu2 %v49_v4 }
  0x1b   :  { %548 = vmatpush.msrb.mxu3 %v49_v4  ;;  %623 = vmatpush.msra.mxu0 %v50_v1 }
  0x1c   :  { %397 = vmatpush.msrb.mxu1 %v48_v5  ;;  %473 = vmatpush.msrb.mxu2 %v48_v5 }
  0x1d   :  { %549 = vmatpush.msrb.mxu3 %v48_v5  ;;  %624 = vmatpush.msra.mxu0 %v49_v4 }
  0x1f   :  { %625 = vmatpush.msra.mxu0 %v48_v5 }
  0x8c   :  { %v80_v8 = vpop.f32.mrf.mxu0 }
  0x8d   :  { %v943_v9 = vadd.f32 %v774_v7, %v80_v8 }
  0x91   :  { %v104_v10 = vpop.f32.mrf.mxu1 }
  0x92   :  { %v107_v11 = vadd.f32 %v104_v10, %v943_v9 }
  0x94   :  { %v742_v12 = vmul.f32 -1.442695, %v107_v11 }
  0x96   :  { %776 = vpow2.f32 %v742_v12 }
  0x9c   :  { %v777_v13 = vpop.eup %776 }
  0x9d   :  { %v111_v14 = vadd.f32 1.0, %v777_v13 }
  0x9f   :  { %778 = vrcp.f32 %v111_v14  ;;  %v123_v18 = vand.u32 2147483648, %v111_v14  ;;  %v121_v20 = vand.u32 2147483647, %v111_v14  ;;  %vm117_vm3 = vweird.f32 %v111_v14 }
  0xa1   :  { %v124_v22 = vor.u32 1.1754944e-38, %v123_v18  ;;  %vm122_vm5 = vcmp.eq.f32.partialorder %v121_v20, 8.507059e+37 }
  0xa5   :  { %v779_v15 = vpop.eup %778 }
  0xa6   :  { %v113_v16 = vmul.f32 %v779_v15, %v111_v14  ;;  %vm118_vm2 = vweird.f32 %v779_v15 }
  0xa7   :  { %vm119_vm4 = vmor %vm117_vm3, %vm118_vm2 }
  0xa8   :  { %v114_v17 = vsub.f32 1.0, %v113_v16 }
  0xaa   :  { %v115_v19 = vmul.f32 %v779_v15, %v114_v17 }
  0xac   :  { %v116_v21 = vadd.f32 %v779_v15, %v115_v19 }
  0xae   :  { %v120_v23 = vsel %vm119_vm4, %v779_v15, %v116_v21 }
  0xaf   :  { %v125_v24 = vsel %vm122_vm5, %v124_v22, %v120_v23 }
  0xb0   :  { %v127_v25 = vmul.f32 2.0, %v125_v24  ;;  %v129_v29 = vmul.f32 0.0, %v125_v24 }
  0xb2   :  { %v743_v26 = vadd.f32 -1.0, %v127_v25 }
  0xb4   :  { %131 = vrot.lane.b32.xlu0 %v743_v26, %s911_s0 }
 0x126   :  { %v132_v27 = vpop.permute.xlu0 %131 }
 0x127   :  { %v134_v28 = vmul.f32 %v132_v27, %v125_v24 }
 0x129   :  { %136 = vrot.lane.b32.xlu0 %v134_v28, %s912_s24 }
 0x19b   :  { %v137_v30 = vpop.permute.xlu0 %136 }
 0x19c   :  { %v139_v31 = vadd.f32 %v137_v30, %v129_v29 }
 0x19e   :  { %780 = vtanh.f32 %v139_v31  ;;  %v200_v56 = vrot.slane %v139_v31, 7 }
 0x1a4   :  { %v781_v32 = vpop.eup %780 }
 0x1a5   :  { %142 = vrot.lane.b32.xlu1 %v781_v32, %s911_s0 }
 0x217   :  { %v143_v33 = vpop.permute.xlu1 %142 }
 0x218   :  { %v145_v34 = vmul.f32 %v143_v33, %v125_v24 }
 0x21a   :  { %147 = vrot.lane.b32.xlu1 %v145_v34, %s912_s24 }
 0x28c   :  { %v148_v35 = vpop.permute.xlu1 %147 }
 0x28d   :  { %151 = vst.msk [vmem:[#allocation2] sm:$0x1] %vm150_vm6, %v148_v35  ;;  %744 = vmatmul.msk.f32.vlgmr.msra.gmra.mxu2 %vm83_vm7, %v148_v35 }
 0x310   :  { %v171_v36 = vpop.f32.mrf.mxu2 }
 0x311   :  { %v175_v37 = vrot.slane %v171_v36, 7 }
 0x313   :  { %v177_v38 = vadd.f32 %v175_v37, %v943_v9 }
 0x315   :  { %v745_v39 = vmul.f32 -1.442695, %v177_v38 }
 0x317   :  { %782 = vpow2.f32 %v745_v39 }
 0x31d   :  { %v783_v40 = vpop.eup %782 }
 0x31e   :  { %v181_v41 = vadd.f32 1.0, %v783_v40 }
 0x320   :  { %784 = vrcp.f32 %v181_v41  ;;  %v193_v45 = vand.u32 2147483648, %v181_v41  ;;  %v191_v47 = vand.u32 2147483647, %v181_v41  ;;  %vm187_vm9 = vweird.f32 %v181_v41 }
 0x322   :  { %v194_v49 = vor.u32 1.1754944e-38, %v193_v45  ;;  %vm192_vm11 = vcmp.eq.f32.partialorder %v191_v47, 8.507059e+37 }
 0x326   :  { %v785_v42 = vpop.eup %784 }
 0x327   :  { %v183_v43 = vmul.f32 %v785_v42, %v181_v41  ;;  %vm188_vm8 = vweird.f32 %v785_v42 }
 0x328   :  { %vm189_vm10 = vmor %vm187_vm9, %vm188_vm8 }
 0x329   :  { %v184_v44 = vsub.f32 1.0, %v183_v43 }
 0x32b   :  { %v185_v46 = vmul.f32 %v785_v42, %v184_v44 }
 0x32d   :  { %v186_v48 = vadd.f32 %v785_v42, %v185_v46 }
 0x32f   :  { %v190_v50 = vsel %vm189_vm10, %v785_v42, %v186_v48 }
 0x330   :  { %v195_v51 = vsel %vm192_vm11, %v194_v49, %v190_v50 }
 0x331   :  { %v197_v52 = vmul.f32 2.0, %v195_v51  ;;  %v202_v57 = vmul.f32 %v200_v56, %v195_v51 }
 0x333   :  { %v746_v53 = vadd.f32 -1.0, %v197_v52 }
 0x335   :  { %204 = vrot.lane.b32.xlu2 %v746_v53, %s911_s0 }
 0x38f   :  { %v205_v54 = vpop.permute.xlu2 %204 }
 0x390   :  { %v207_v55 = vmul.f32 %v205_v54, %v195_v51 }
 0x392   :  { %209 = vrot.lane.b32.xlu2 %v207_v55, %s912_s24 }
 0x3ec   :  { %v210_v58 = vpop.permute.xlu2 %209 }
 0x3ed   :  { %v212_v59 = vadd.f32 %v210_v58, %v202_v57 }
 0x3ef   :  { %786 = vtanh.f32 %v212_v59  ;;  %v276_v22 = vrot.slane %v212_v59, 7 }
 0x3f5   :  { %v787_v60 = vpop.eup %786 }
 0x3f6   :  { %215 = vrot.lane.b32.xlu0 %v787_v60, %s911_s0 }
 0x468   :  { %v216_v61 = vpop.permute.xlu0 %215 }
 0x469   :  { %v955_v62 = vmul.f32 %v216_v61, %v195_v51 }
 0x46b   :  { %v225_v63 = vrot.slane %v955_v62, 1 }
 0x46d   :  { %226 = vrot.lane.b32.xlu1 %v225_v63, %s912_s24 }
 0x4df   :  { %v227_v0 = vpop.permute.xlu1 %226 }
 0x4e0   :  { %747 = vmatmul.msk.f32.vlgmr.msra.gmra.mxu3 %vm83_vm7, %v227_v0 }
 0x563   :  { %v247_v1 = vpop.f32.mrf.mxu3 }
 0x564   :  { %v251_v2 = vrot.slane %v247_v1, 6 }
 0x566   :  { %v253_v3 = vadd.f32 %v251_v2, %v943_v9 }
 0x568   :  { %v748_v4 = vmul.f32 -1.442695, %v253_v3 }
 0x56a   :  { %788 = vpow2.f32 %v748_v4 }
 0x570   :  { %v789_v5 = vpop.eup %788 }
 0x571   :  { %v257_v6 = vadd.f32 1.0, %v789_v5 }
 0x573   :  { %790 = vrcp.f32 %v257_v6  ;;  %v269_v11 = vand.u32 2147483648, %v257_v6  ;;  %v267_v13 = vand.u32 2147483647, %v257_v6  ;;  %vm263_vm13 = vweird.f32 %v257_v6 }
 0x575   :  { %v270_v15 = vor.u32 1.1754944e-38, %v269_v11  ;;  %vm268_vm15 = vcmp.eq.f32.partialorder %v267_v13, 8.507059e+37 }
 0x579   :  { %v791_v7 = vpop.eup %790 }
 0x57a   :  { %v259_v8 = vmul.f32 %v791_v7, %v257_v6  ;;  %vm264_vm12 = vweird.f32 %v791_v7 }
 0x57b   :  { %vm265_vm14 = vmor %vm263_vm13, %vm264_vm12 }
 0x57c   :  { %v260_v10 = vsub.f32 1.0, %v259_v8 }
 0x57e   :  { %v261_v12 = vmul.f32 %v791_v7, %v260_v10 }
 0x580   :  { %v262_v14 = vadd.f32 %v791_v7, %v261_v12 }
 0x582   :  { %v266_v16 = vsel %vm265_vm14, %v791_v7, %v262_v14 }
 0x583   :  { %v271_v17 = vsel %vm268_vm15, %v270_v15, %v266_v16 }
 0x584   :  { %v273_v18 = vmul.f32 2.0, %v271_v17  ;;  %v278_v23 = vmul.f32 %v276_v22, %v271_v17 }
 0x586   :  { %v749_v19 = vadd.f32 -1.0, %v273_v18 }
 0x588   :  { %280 = vrot.lane.b32.xlu2 %v749_v19, %s911_s0 }
 0x5e2   :  { %v281_v20 = vpop.permute.xlu2 %280 }
 0x5e3   :  { %v283_v21 = vmul.f32 %v281_v20, %v271_v17 }
 0x5e5   :  { %285 = vrot.lane.b32.xlu0 %v283_v21, %s912_s24 }
 0x657   :  { %v286_v24 = vpop.permute.xlu0 %285 }
 0x658   :  { %v288_v25 = vadd.f32 %v286_v24, %v278_v23 }
 0x65a   :  { %792 = vtanh.f32 %v288_v25  ;;  %v352_v51 = vrot.slane %v288_v25, 7 }
 0x660   :  { %v793_v26 = vpop.eup %792 }
 0x661   :  { %291 = vrot.lane.b32.xlu1 %v793_v26, %s911_s0 }
 0x6d3   :  { %v292_v27 = vpop.permute.xlu1 %291 }
 0x6d4   :  { %v964_v28 = vmul.f32 %v292_v27, %v271_v17 }
 0x6d6   :  { %v301_v29 = vrot.slane %v964_v28, 2 }
 0x6d8   :  { %302 = vrot.lane.b32.xlu2 %v301_v29, %s912_s24 }
 0x732   :  { %v303_v30 = vpop.permute.xlu2 %302 }
 0x733   :  { %750 = vmatmul.msk.f32.vlgmr.msrb.gmra.mxu0 %vm83_vm7, %v303_v30 }
 0x7b0   :  { %v323_v31 = vpop.f32.mrf.mxu0 }
 0x7b1   :  { %v327_v32 = vrot.slane %v323_v31, 5 }
 0x7b3   :  { %v329_v33 = vadd.f32 %v327_v32, %v943_v9 }
 0x7b5   :  { %v751_v34 = vmul.f32 -1.442695, %v329_v33 }
 0x7b7   :  { %794 = vpow2.f32 %v751_v34 }
 0x7bd   :  { %v795_v35 = vpop.eup %794 }
 0x7be   :  { %v333_v36 = vadd.f32 1.0, %v795_v35 }
 0x7c0   :  { %796 = vrcp.f32 %v333_v36  ;;  %v345_v40 = vand.u32 2147483648, %v333_v36  ;;  %v343_v42 = vand.u32 2147483647, %v333_v36  ;;  %vm339_vm1 = vweird.f32 %v333_v36 }
 0x7c2   :  { %v346_v44 = vor.u32 1.1754944e-38, %v345_v40  ;;  %vm344_vm3 = vcmp.eq.f32.partialorder %v343_v42, 8.507059e+37 }
 0x7c6   :  { %v797_v37 = vpop.eup %796 }
 0x7c7   :  { %v335_v38 = vmul.f32 %v797_v37, %v333_v36  ;;  %vm340_vm0 = vweird.f32 %v797_v37 }
 0x7c8   :  { %vm341_vm2 = vmor %vm339_vm1, %vm340_vm0 }
 0x7c9   :  { %v336_v39 = vsub.f32 1.0, %v335_v38 }
 0x7cb   :  { %v337_v41 = vmul.f32 %v797_v37, %v336_v39 }
 0x7cd   :  { %v338_v43 = vadd.f32 %v797_v37, %v337_v41 }
 0x7cf   :  { %v342_v45 = vsel %vm341_vm2, %v797_v37, %v338_v43 }
 0x7d0   :  { %v347_v46 = vsel %vm344_vm3, %v346_v44, %v342_v45 }
 0x7d1   :  { %v349_v47 = vmul.f32 2.0, %v347_v46  ;;  %v354_v52 = vmul.f32 %v352_v51, %v347_v46 }
 0x7d3   :  { %v752_v48 = vadd.f32 -1.0, %v349_v47 }
 0x7d5   :  { %356 = vrot.lane.b32.xlu0 %v752_v48, %s911_s0 }
 0x847   :  { %v357_v49 = vpop.permute.xlu0 %356 }
 0x848   :  { %v359_v50 = vmul.f32 %v357_v49, %v347_v46 }
 0x84a   :  { %361 = vrot.lane.b32.xlu1 %v359_v50, %s912_s24 }
 0x8bc   :  { %v362_v53 = vpop.permute.xlu1 %361 }
 0x8bd   :  { %v364_v54 = vadd.f32 %v362_v53, %v354_v52 }
 0x8bf   :  { %798 = vtanh.f32 %v364_v54  ;;  %v428_v18 = vrot.slane %v364_v54, 7 }
 0x8c5   :  { %v799_v55 = vpop.eup %798 }
 0x8c6   :  { %367 = vrot.lane.b32.xlu2 %v799_v55, %s911_s0 }
 0x920   :  { %v368_v56 = vpop.permute.xlu2 %367 }
 0x921   :  { %v973_v57 = vmul.f32 %v368_v56, %v347_v46 }
 0x923   :  { %v377_v58 = vrot.slane %v973_v57, 3 }
 0x925   :  { %378 = vrot.lane.b32.xlu0 %v377_v58, %s912_s24 }
 0x997   :  { %v379_v59 = vpop.permute.xlu0 %378 }
 0x998   :  { %753 = vmatmul.msk.f32.vlgmr.msrb.gmra.mxu1 %vm83_vm7, %v379_v59 }
 0xa15   :  { %v399_v60 = vpop.f32.mrf.mxu1 }
 0xa16   :  { %v403_v61 = vrot.slane %v399_v60, 4 }
 0xa18   :  { %v405_v63 = vadd.f32 %v403_v61, %v943_v9 }
 0xa1a   :  { %v754_v0 = vmul.f32 -1.442695, %v405_v63 }
 0xa1c   :  { %800 = vpow2.f32 %v754_v0 }
 0xa22   :  { %v801_v1 = vpop.eup %800 }
 0xa23   :  { %v409_v2 = vadd.f32 1.0, %v801_v1 }
 0xa25   :  { %802 = vrcp.f32 %v409_v2  ;;  %v421_v6 = vand.u32 2147483648, %v409_v2  ;;  %v419_v8 = vand.u32 2147483647, %v409_v2  ;;  %vm415_vm5 = vweird.f32 %v409_v2 }
 0xa27   :  { %v422_v11 = vor.u32 1.1754944e-38, %v421_v6  ;;  %vm420_vm8 = vcmp.eq.f32.partialorder %v419_v8, 8.507059e+37 }
 0xa2b   :  { %v803_v3 = vpop.eup %802 }
 0xa2c   :  { %v411_v4 = vmul.f32 %v803_v3, %v409_v2  ;;  %vm416_vm4 = vweird.f32 %v803_v3 }
 0xa2d   :  { %vm417_vm6 = vmor %vm415_vm5, %vm416_vm4  ;;  %vm223_vm5 = vcmask 254977  }
 0xa2e   :  { %v412_v5 = vsub.f32 1.0, %v411_v4 }
 0xa30   :  { %v413_v7 = vmul.f32 %v803_v3, %v412_v5 }
 0xa32   :  { %v414_v10 = vadd.f32 %v803_v3, %v413_v7 }
 0xa34   :  { %v418_v12 = vsel %vm417_vm6, %v803_v3, %v414_v10  ;;  %vm451_vm6 = vcmask 258052  }
 0xa35   :  { %v423_v13 = vsel %vm420_vm8, %v422_v11, %v418_v12  ;;  %vm299_vm8 = vcmask 256002  }
 0xa36   :  { %v425_v14 = vmul.f32 2.0, %v423_v13  ;;  %v430_v19 = vmul.f32 %v428_v18, %v423_v13 }
 0xa38   :  { %v755_v15 = vadd.f32 -1.0, %v425_v14 }
 0xa3a   :  { %432 = vrot.lane.b32.xlu1 %v755_v15, %s911_s0 }
 0xaac   :  { %v433_v16 = vpop.permute.xlu1 %432 }
 0xaad   :  { %v435_v17 = vmul.f32 %v433_v16, %v423_v13 }
 0xaaf   :  { %437 = vrot.lane.b32.xlu2 %v435_v17, %s912_s24 }
 0xb09   :  { %v438_v20 = vpop.permute.xlu2 %437 }
 0xb0a   :  { %v440_v21 = vadd.f32 %v438_v20, %v430_v19 }
 0xb0c   :  { %804 = vtanh.f32 %v440_v21  ;;  %v504_v48 = vrot.slane %v440_v21, 7 }
 0xb12   :  { %v805_v22 = vpop.eup %804 }
 0xb13   :  { %443 = vrot.lane.b32.xlu0 %v805_v22, %s911_s0 }
 0xb85   :  { %v444_v23 = vpop.permute.xlu0 %443 }
 0xb86   :  { %v982_v24 = vmul.f32 %v444_v23, %v423_v13 }
 0xb88   :  { %v453_v25 = vrot.slane %v982_v24, 4 }
 0xb8a   :  { %454 = vrot.lane.b32.xlu1 %v453_v25, %s912_s24 }
 0xbfc   :  { %v455_v26 = vpop.permute.xlu1 %454 }
 0xbfd   :  { %756 = vmatmul.msk.f32.vlgmr.msrb.gmra.mxu2 %vm83_vm7, %v455_v26 }
 0xc80   :  { %v475_v27 = vpop.f32.mrf.mxu2 }
 0xc81   :  { %v479_v29 = vrot.slane %v475_v27, 3 }
 0xc83   :  { %v481_v30 = vadd.f32 %v479_v29, %v943_v9 }
 0xc85   :  { %v757_v31 = vmul.f32 -1.442695, %v481_v30 }
 0xc87   :  { %806 = vpow2.f32 %v757_v31 }
 0xc8d   :  { %v807_v32 = vpop.eup %806 }
 0xc8e   :  { %v485_v33 = vadd.f32 1.0, %v807_v32 }
 0xc90   :  { %808 = vrcp.f32 %v485_v33  ;;  %v497_v37 = vand.u32 2147483648, %v485_v33  ;;  %v495_v39 = vand.u32 2147483647, %v485_v33  ;;  %vm491_vm10 = vweird.f32 %v485_v33 }
 0xc92   :  { %v498_v41 = vor.u32 1.1754944e-38, %v497_v37  ;;  %vm496_vm12 = vcmp.eq.f32.partialorder %v495_v39, 8.507059e+37 }
 0xc96   :  { %v809_v34 = vpop.eup %808 }
 0xc97   :  { %v487_v35 = vmul.f32 %v809_v34, %v485_v33  ;;  %vm492_vm9 = vweird.f32 %v809_v34 }
 0xc98   :  { %vm493_vm11 = vmor %vm491_vm10, %vm492_vm9  ;;  %vm527_vm9 = vcmask 259077   ;;  %vm375_vm10 = vcmask 257027  }
 0xc99   :  { %v488_v36 = vsub.f32 1.0, %v487_v35 }
 0xc9b   :  { %v489_v38 = vmul.f32 %v809_v34, %v488_v36 }
 0xc9d   :  { %v490_v40 = vadd.f32 %v809_v34, %v489_v38 }
 0xc9f   :  { %v494_v42 = vsel %vm493_vm11, %v809_v34, %v490_v40  ;;  %vm603_vm11 = vcmask 260102  }
 0xca0   :  { %v499_v43 = vsel %vm496_vm12, %v498_v41, %v494_v42  ;;  %vm679_vm12 = vcmask 261127  }
 0xca1   :  { %v501_v44 = vmul.f32 2.0, %v499_v43  ;;  %v506_v49 = vmul.f32 %v504_v48, %v499_v43 }
 0xca3   :  { %v758_v45 = vadd.f32 -1.0, %v501_v44 }
 0xca5   :  { %508 = vrot.lane.b32.xlu2 %v758_v45, %s911_s0 }
 0xcff   :  { %v509_v46 = vpop.permute.xlu2 %508 }
 0xd00   :  { %v511_v47 = vmul.f32 %v509_v46, %v499_v43 }
 0xd02   :  { %513 = vrot.lane.b32.xlu0 %v511_v47, %s912_s24 }
 0xd74   :  { %v514_v50 = vpop.permute.xlu0 %513 }
 0xd75   :  { %v516_v51 = vadd.f32 %v514_v50, %v506_v49 }
 0xd77   :  { %810 = vtanh.f32 %v516_v51  ;;  %v580_v16 = vrot.slane %v516_v51, 7 }
 0xd7d   :  { %v811_v52 = vpop.eup %810 }
 0xd7e   :  { %519 = vrot.lane.b32.xlu1 %v811_v52, %s911_s0 }
 0xdf0   :  { %v520_v53 = vpop.permute.xlu1 %519 }
 0xdf1   :  { %v991_v54 = vmul.f32 %v520_v53, %v499_v43 }
 0xdf3   :  { %v529_v55 = vrot.slane %v991_v54, 5 }
 0xdf5   :  { %530 = vrot.lane.b32.xlu2 %v529_v55, %s912_s24 }
 0xe4f   :  { %v531_v56 = vpop.permute.xlu2 %530 }
 0xe50   :  { %759 = vmatmul.msk.f32.vlgmr.msrb.gmra.mxu3 %vm83_vm7, %v531_v56  ;;  %v684_v56 = vld [vmem:[#allocation6 + $0x18] sm:$0xff] }
 0xe51   :  { %703 = vmatpush.msra.mxu1 %v684_v56 }
 0xed3   :  { %v551_v58 = vpop.f32.mrf.mxu3 }
 0xed4   :  { %v555_v59 = vrot.slane %v551_v58, 2  ;;  %v683_v58 = vld [vmem:[#allocation6 + $0x10] sm:$0xff] }
 0xed5   :  { %704 = vmatpush.msra.mxu1 %v683_v58 }
 0xed6   :  { %v557_v60 = vadd.f32 %v555_v59, %v943_v9  ;;  %v682_v59 = vld [vmem:[#allocation6 + $0x8] sm:$0xff] }
 0xed7   :  { %705 = vmatpush.msra.mxu1 %v682_v59 }
 0xed8   :  { %v760_v61 = vmul.f32 -1.442695, %v557_v60  ;;  %v681_v60 = vld [vmem:[#allocation6] sm:$0xff] }
 0xed9   :  { %706 = vmatpush.msra.mxu1 %v681_v60 }
 0xeda   :  { %812 = vpow2.f32 %v760_v61 }
 0xee0   :  { %v813_v63 = vpop.eup %812 }
 0xee1   :  { %v561_v0 = vadd.f32 1.0, %v813_v63  ;;  %v775_v63 = vld [vmem:[#allocation6 + $0x20] ss:$0 sm:$0xff] }
 0xee3   :  { %814 = vrcp.f32 %v561_v0  ;;  %v573_v4 = vand.u32 2147483648, %v561_v0  ;;  %v571_v6 = vand.u32 2147483647, %v561_v0  ;;  %vm567_vm14 = vweird.f32 %v561_v0 }
 0xee5   :  { %v574_v8 = vor.u32 1.1754944e-38, %v573_v4  ;;  %vm572_vm0 = vcmp.eq.f32.partialorder %v571_v6, 8.507059e+37 }
 0xee9   :  { %v815_v1 = vpop.eup %814 }
 0xeea   :  { %v563_v2 = vmul.f32 %v815_v1, %v561_v0  ;;  %vm568_vm13 = vweird.f32 %v815_v1 }
 0xeeb   :  { %vm569_vm15 = vmor %vm567_vm14, %vm568_vm13 }
 0xeec   :  { %v564_v3 = vsub.f32 1.0, %v563_v2 }
 0xeee   :  { %v565_v5 = vmul.f32 %v815_v1, %v564_v3 }
 0xef0   :  { %v566_v7 = vadd.f32 %v815_v1, %v565_v5 }
 0xef2   :  { %v570_v10 = vsel %vm569_vm15, %v815_v1, %v566_v7 }
 0xef3   :  { %v575_v11 = vsel %vm572_vm0, %v574_v8, %v570_v10 }
 0xef4   :  { %v577_v12 = vmul.f32 2.0, %v575_v11  ;;  %v582_v17 = vmul.f32 %v580_v16, %v575_v11 }
 0xef6   :  { %v761_v13 = vadd.f32 -1.0, %v577_v12 }
 0xef8   :  { %584 = vrot.lane.b32.xlu0 %v761_v13, %s911_s0 }
 0xf6a   :  { %v585_v14 = vpop.permute.xlu0 %584 }
 0xf6b   :  { %v587_v15 = vmul.f32 %v585_v14, %v575_v11 }
 0xf6d   :  { %589 = vrot.lane.b32.xlu1 %v587_v15, %s912_s24 }
 0xfdf   :  { %v590_v18 = vpop.permute.xlu1 %589 }
 0xfe0   :  { %v592_v19 = vadd.f32 %v590_v18, %v582_v17 }
 0xfe2   :  { %816 = vtanh.f32 %v592_v19 }
 0xfe8   :  { %v817_v20 = vpop.eup %816 }
 0xfe9   :  { %595 = vrot.lane.b32.xlu2 %v817_v20, %s911_s0 }
0x1043   :  { %v596_v21 = vpop.permute.xlu2 %595 }
0x1044   :  { %v598_v22 = vmul.f32 %v596_v21, %v575_v11 }
0x1046   :  { %v605_v23 = vrot.slane %v598_v22, 6 }
0x1048   :  { %606 = vrot.lane.b32.xlu0 %v605_v23, %s912_s24 }
0x10ba   :  { %v607_v25 = vpop.permute.xlu0 %606 }
0x10bb   :  { %762 = vmatmul.msk.f32.vlgmr.msra.gmra.mxu0 %vm83_vm7, %v607_v25 }
0x1138   :  { %v627_v26 = vpop.f32.mrf.mxu0 }
0x1139   :  { %v631_v27 = vrot.slane %v627_v26, 1 }
0x113b   :  { %v633_v29 = vadd.f32 %v631_v27, %v943_v9 }
0x113d   :  { %v763_v30 = vmul.f32 -1.442695, %v633_v29 }
0x113f   :  { %818 = vpow2.f32 %v763_v30 }
0x1145   :  { %v819_v31 = vpop.eup %818 }
0x1146   :  { %v637_v32 = vadd.f32 1.0, %v819_v31 }
0x1148   :  { %820 = vrcp.f32 %v637_v32  ;;  %v649_v36 = vand.u32 2147483648, %v637_v32  ;;  %v647_v38 = vand.u32 2147483647, %v637_v32  ;;  %vm643_vm2 = vweird.f32 %v637_v32 }
0x114a   :  { %v650_v40 = vor.u32 1.1754944e-38, %v649_v36  ;;  %vm648_vm4 = vcmp.eq.f32.partialorder %v647_v38, 8.507059e+37 }
0x114e   :  { %v821_v33 = vpop.eup %820 }
0x114f   :  { %v639_v34 = vmul.f32 %v821_v33, %v637_v32  ;;  %vm644_vm1 = vweird.f32 %v821_v33 }
0x1150   :  { %vm645_vm3 = vmor %vm643_vm2, %vm644_vm1 }
0x1151   :  { %v640_v35 = vsub.f32 1.0, %v639_v34 }
0x1153   :  { %v641_v37 = vmul.f32 %v821_v33, %v640_v35 }
0x1155   :  { %v642_v39 = vadd.f32 %v821_v33, %v641_v37 }
0x1157   :  { %v646_v41 = vsel %vm645_vm3, %v821_v33, %v642_v39 }
0x1158   :  { %v651_v42 = vsel %vm648_vm4, %v650_v40, %v646_v41 }
0x1159   :  { %v653_v9 = vmul.f32 2.0, %v651_v42 }
0x115b   :  { %v764_v43 = vadd.f32 -1.0, %v653_v9 }
0x115d   :  { %660 = vrot.lane.b32.xlu1 %v764_v43, %s911_s0 }
0x1165   :  { %220 = vrot.lane.b32.xlu1 %v955_v62, %s912_s24  ;;  %v656_v62 = vrot.slane %v592_v19, 7 }
0x1167   :  { %v658_v48 = vmul.f32 %v656_v62, %v651_v42 }
0x116d   :  { %448 = vrot.lane.b32.xlu1 %v982_v24, %s912_s24 }
0x11cf   :  { %v661_v44 = vpop.permute.xlu1 %660 }
0x11d0   :  { %v663_v45 = vmul.f32 %v661_v44, %v651_v42 }
0x11d2   :  { %665 = vrot.lane.b32.xlu2 %v663_v45, %s912_s24 }
0x11d7   :  { %v221_v46 = vpop.permute.xlu1 %220 }
0x11d8   :  { %224 = vst.msk [vmem:[#allocation2] sm:$0x2] %vm223_vm5, %v221_v46 }
0x11da   :  { %296 = vrot.lane.b32.xlu2 %v964_v28, %s912_s24 }
0x11df   :  { %v449_v47 = vpop.permute.xlu1 %448 }
0x11e0   :  { %452 = vst.msk [vmem:[#allocation2] sm:$0x10] %vm451_vm6, %v449_v47 }
0x11e2   :  { %524 = vrot.lane.b32.xlu2 %v991_v54, %s912_s24 }
0x122c   :  { %v666_v49 = vpop.permute.xlu2 %665 }
0x122d   :  { %v668_v24 = vadd.f32 %v666_v49, %v658_v48 }
0x122f   :  { %822 = vtanh.f32 %v668_v24 }
0x1234   :  { %v297_v50 = vpop.permute.xlu2 %296 }
0x1235   :  { %v823_v51 = vpop.eup %822  ;;  %300 = vst.msk [vmem:[#allocation2] sm:$0x4] %vm299_vm8, %v297_v50 }
0x1236   :  { %671 = vrot.lane.b32.xlu0 %v823_v51, %s911_s0 }
0x123c   :  { %v525_v52 = vpop.permute.xlu2 %524 }
0x123d   :  { %528 = vst.msk [vmem:[#allocation2] sm:$0x20] %vm527_vm9, %v525_v52 }
0x123e   :  { %372 = vrot.lane.b32.xlu0 %v973_v57, %s912_s24 }
0x1246   :  { %600 = vrot.lane.b32.xlu0 %v598_v22, %s912_s24 }
0x12a8   :  { %v672_v28 = vpop.permute.xlu0 %671 }
0x12a9   :  { %v674_v53 = vmul.f32 %v672_v28, %v651_v42 }
0x12ab   :  { %676 = vrot.lane.b32.xlu1 %v674_v53, %s912_s24 }
0x12b0   :  { %v373_v54 = vpop.permute.xlu0 %372 }
0x12b1   :  { %376 = vst.msk [vmem:[#allocation2] sm:$0x8] %vm375_vm10, %v373_v54 }
0x12b8   :  { %v601_v55 = vpop.permute.xlu0 %600 }
0x12b9   :  { %604 = vst.msk [vmem:[#allocation2] sm:$0x40] %vm603_vm11, %v601_v55 }
0x131d   :  { %v677_v57 = vpop.permute.xlu1 %676 }
0x131e   :  { %680 = vst.msk [vmem:[#allocation2] sm:$0x80] %vm679_vm12, %v677_v57 }
0x1325   :  { %v686_v61 = vld [vmem:[#allocation2] sm:$0xff] }
0x1326   :  { %765 = vmatmul.msk.f32.vlgmr.msra.gmra.mxu1 %vm83_vm7, %v686_v61 }
0x13a3   :  { %v708_v0 = vpop.f32.mrf.mxu1 }
0x13a4   :  { %v709_v1 = vadd.f32 %v775_v63, %v708_v0 }
0x13a6   :  { %711 = vmax.xlane.f32.xlu2 %v709_v1 }
0x1419   :  { %v712_v2 = vpop.xlane.xlu2 %711 }
0x141a   :  { %v713_v3 = vsub.f32 %v709_v1, %v712_v2 }
0x141c   :  { %v714_v4 = vmul.f32 1.442695, %v713_v3 }
0x141e   :  { %824 = vpow2.f32 %v714_v4 }
0x1424   :  { %v825_v5 = vpop.eup %824 }
0x1425   :  { %716 = vadd.xlane.f32.xlu0 %v825_v5 }
0x1498   :  { %v717_v6 = vpop.xlane.xlu0 %716 }
0x1499   :  { %826 = vlog2.f32 %v717_v6 }
0x149f   :  { %v827_v7 = vpop.eup %826 }
0x14a0   :  { %v719_v8 = vmul.f32 0.6931472, %v827_v7 }
0x14a2   :  { %v720_v10 = vsub.f32 %v713_v3, %v719_v8 }
0x14a4   :  { %721 = vst [vmem:[#allocation8] sm:$0xff] %v720_v10 }
0x14a5   :  { %732 = dma.vmem_to_hbm [thread:$0]  %s728_s26, 128, %s730_s29, [#allocation5]  }
0x14a6   :  { %904 = dma.done.wait [#allocation5], 128  }
0x14a7   :  { %905 = vsyncadd [#allocation5], 4294967168 }
0x14a8   :  { %737 = vsyncpa [#allocation4], 1 }
0x14a9   :  { %738 = vsyncpa [#allocation7], 1 }
0x14aa   :  { %739 = vsyncpa [#allocation5], 1 }

</bundles_post_ra>
